<compile_context>
chip_gen: v6e
topology: v6e:2x2x1
jax: 0.10.0
libtpu: 0.0.40
codegen_flags: <defaults>
</compile_context>

<pallas_src>
import jax
import jax.numpy as jnp
from jax.experimental import pallas as pl
from jax.experimental.pallas import tpu as pltpu

_LANES = 128
_MAX_BLOCK_ROWS = 1024   # 1024 x 128 f32 = 512 KiB per input per buffer


def _round_up(x, m):
    return ((x + m - 1) // m) * m


def _default_num_splits():
    # Only v7x has 2 TensorCores per chip; on 1-TC chips a split axis just adds
    # padding granularity and a second epilogue, so default to 1 there.
    try:
        kind = jax.devices()[0].device_kind.lower()
    except Exception:
        return 1
    return 2 if ("v7" in kind or "7x" in kind) else 1


def _make_kernel(block_rows):
    """Kernel over 4 input blocks whose flattened shape is (block_rows, 128)."""
    if block_rows % 8 == 0:
        acc_rows = 8
        groups = block_rows // 8
    else:                       # tiny-block corner case (e.g. small test shapes)
        acc_rows = block_rows
        groups = 1

    def fold(x):                # x: (block_rows, 128) f32 -> (acc_rows, 128)
        if groups == 1:
            return x
        # Leading-axis sum -> plain VPU adds, no cross-lane (XLU) work.
        return x.reshape(groups, acc_rows, _LANES).sum(axis=0)

    def kernel(p_th_ref, g_th_ref, p_ph_ref, g_ph_ref, out_ref, acc_ref):
        # grid = (split [parallel], batch-blocks [arbitrary], row-blocks [arbitrary])
        b = pl.program_id(1)
        r = pl.program_id(2)

        @pl.when((b == 0) & (r == 0))
        def _():
            acc_ref[...] = jnp.zeros_like(acc_ref)

        p_th = p_th_ref[...].astype(jnp.float32).reshape(-1, _LANES)
        g_th = g_th_ref[...].astype(jnp.float32).reshape(-1, _LANES)
        p_ph = p_ph_ref[...].astype(jnp.float32).reshape(-1, _LANES)
        g_ph = g_ph_ref[...].astype(jnp.float32).reshape(-1, _LANES)

        term_phi = jnp.abs(p_ph - g_ph)
        d_th = jnp.abs(p_th - g_th)
        term_theta = 2.0 * jnp.minimum(d_th, 1.0 - d_th)

        # Zero-padded tail elements (Path B) contribute exactly 0 to both terms,
        # and both terms share the same 1/(B*H*W) divisor -> accumulate together.
        acc_ref[...] += fold(term_phi + term_theta)

        @pl.when((b == pl.num_programs(1) - 1) & (r == pl.num_programs(2) - 1))
        def _():
            # Single cross-lane reduction per split, once in the epilogue.
            out_ref[0, 0] = jnp.sum(acc_ref[...])

    return kernel, acc_rows


def circle_loss(normal_preds, gt_normals, *, num_splits=None,
                max_block_rows=_MAX_BLOCK_ROWS):
    assert normal_preds.shape == gt_normals.shape
    B, C, H, W = normal_preds.shape
    assert C >= 2, "circle_loss expects at least 2 channels (theta, phi)"

    if num_splits is None:
        num_splits = _default_num_splits()
    num_splits = max(1, int(num_splits))

    N = B * H * W
    inv_n = 1.0 / float(N)

    # ---------------- decide path / tiling ----------------
    direct = (H * W) % _LANES == 0
    tile_r = None
    if direct:
        R = (H * W) // _LANES
        if R <= max_block_rows:
            tile_r = R                       # full dim -> always a legal block
        else:
            d = (min(R, max_block_rows) // 8) * 8
            while d >= 8:                    # largest multiple-of-8 divisor of R
                if R % d == 0:
                    tile_r = d
                    break
                d -= 8
        if tile_r is None:
            direct = False                   # awkward R -> lane-dense repack path

    if direct:
        # ---- Path A: feed 4D tensors directly, zero wrapper copies. ----
        if B % num_splits != 0:
            num_splits = 1
        B_sub = B // num_splits

        pad_r = _round_up(tile_r, 8)         # VMEM sublane padding per batch elt
        cap_b = max(1, max_block_rows // pad_r)
        tile_b = 1
        d = min(B_sub, cap_b)
        while d >= 1:                        # largest divisor of B_sub <= cap_b
            if B_sub % d == 0:
                tile_b = d
                break
            d -= 1

        bb_per_split = B_sub // tile_b
        r_blocks = R // tile_r
        block_rows = tile_b * tile_r

        kernel, acc_rows = _make_kernel(block_rows)

        # Free reshape (contiguous trailing-dim split, no HBM copy).
        preds_r = normal_preds.reshape(B, C, R, _LANES)
        gts_r = gt_normals.reshape(B, C, R, _LANES)

        def spec(ch):
            return pl.BlockSpec(
                (tile_b, None, tile_r, _LANES),          # channel dim squeezed
                lambda s, b, r, ch=ch: (s * bb_per_split + b, ch, r, 0),
            )

        grid = (num_splits, bb_per_split, r_blocks)
        operands = (preds_r, gts_r, preds_r, gts_r)
        in_specs = [spec(0), spec(0), spec(1), spec(1)]
    else:
        # ---- Path B: lane-dense repack, one fused XLA copy per tensor. ----
        rows = (N + _LANES - 1) // _LANES
        tile_rows = min(max_block_rows, _round_up(rows, 8))
        padded_rows = _round_up(rows, num_splits * tile_rows)
        total = padded_rows * _LANES
        tiles_per_split = padded_rows // (num_splits * tile_rows)

        kernel, acc_rows = _make_kernel(tile_rows)

        def prep(x):
            # (B, C, H, W) -> (2, padded_rows, 128); channel 0 = theta, 1 = phi.
            two = jnp.transpose(x[:, :2, :, :], (1, 0, 2, 3)).reshape(2, N)
            two = jnp.pad(two, ((0, 0), (0, total - N)))
            return two.reshape(2, padded_rows, _LANES)

        preds_p = prep(normal_preds)
        gts_p = prep(gt_normals)

        def spec(ch):
            return pl.BlockSpec(
                (None, tile_rows, _LANES),               # channel dim squeezed
                lambda s, b, i, ch=ch: (ch, s * tiles_per_split + i, 0),
            )

        grid = (num_splits, 1, tiles_per_split)
        operands = (preds_p, gts_p, preds_p, gts_p)
        in_specs = [spec(0), spec(0), spec(1), spec(1)]

    # Per-step VMEM: 4 inputs x 2 buffers x (<=512 KiB) + tiny accumulator
    # -> <= ~4.1 MiB, within the default scoped VMEM limit on v5e/v6e/v7x.
    partials = pl.pallas_call(
        kernel,
        out_shape=jax.ShapeDtypeStruct((num_splits, 1), jnp.float32),
        grid_spec=pltpu.PrefetchScalarGridSpec(
            num_scalar_prefetch=0,
            grid=grid,
            in_specs=in_specs,
            out_specs=pl.BlockSpec(
                (1, 1), lambda s, b, r: (s, 0), memory_space=pltpu.SMEM
            ),
            scratch_shapes=[pltpu.VMEM((acc_rows, _LANES), jnp.float32)],
        ),
        compiler_params=pltpu.CompilerParams(
            # Leading split axis carries independent partial sums -> truly
            # parallel (only >1 on v7x); batch/row axes are the reduction.
            dimension_semantics=("parallel", "arbitrary", "arbitrary"),
        ),
    )(*operands)

    return jnp.sum(partials) * inv_n


def _reference_circle_loss(normal_preds, gt_normals):
    term_phi = jnp.abs(normal_preds[:, 1, :, :] - gt_normals[:, 1, :, :])
    term_theta = jnp.abs(normal_preds[:, 0, :, :] - gt_normals[:, 0, :, :])
    term_theta = 2.0 * jnp.minimum(term_theta, 1.0 - term_theta)
    return term_phi.mean() + term_theta.mean()


if __name__ == "__main__":
    key = jax.random.PRNGKey(0)

    # --- main test: direct (no-copy) path, H*W multiple of 128 ---
    k1, k2, k3, k4 = jax.random.split(key, 4)
    B, C, H, W = 2, 4, 16, 16
    normal_preds = jax.random.uniform(k1, (B, C, H, W), dtype=jnp.float32)
    gt_normals = jax.random.uniform(k2, (B, C, H, W), dtype=jnp.float32)

    loss = circle_loss(normal_preds, gt_normals)
    loss = jax.block_until_ready(loss)
    ref = _reference_circle_loss(normal_preds, gt_normals)
    assert jnp.allclose(loss, ref, rtol=1e-5, atol=1e-5), (loss, ref)

    # --- secondary test: repack fallback path, odd spatial size ---
    B2, C2, H2, W2 = 2, 3, 5, 9
    np2 = jax.random.uniform(k3, (B2, C2, H2, W2), dtype=jnp.float32)
    gt2 = jax.random.uniform(k4, (B2, C2, H2, W2), dtype=jnp.float32)

    loss2 = jax.block_until_ready(circle_loss(np2, gt2))
    ref2 = _reference_circle_loss(np2, gt2)
    assert jnp.allclose(loss2, ref2, rtol=1e-5, atol=1e-5), (loss2, ref2)

    print("KERNEL_OK")
</pallas_src>

<mosaic_0001>
module attributes {stable_mosaic.version = 11 : i64} {
  func.func @kernel(%arg0: i32, %arg1: i32, %arg2: i32, %arg3: memref<2x1x2x128xf32, #tpu.memory_space<vmem>>, %arg4: memref<2x1x2x128xf32, #tpu.memory_space<vmem>>, %arg5: memref<2x1x2x128xf32, #tpu.memory_space<vmem>>, %arg6: memref<2x1x2x128xf32, #tpu.memory_space<vmem>>, %arg7: memref<1x1xf32, #tpu.memory_space<smem>>, %arg8: memref<4x128xf32, #tpu.memory_space<vmem>>) attributes {dimension_semantics = [#tpu.dimension_semantics<parallel>, #tpu.dimension_semantics<arbitrary>, #tpu.dimension_semantics<arbitrary>], iteration_bounds = array<i64: 1, 1, 1>, scalar_prefetch = 0 : i64, scratch_operands = 1 : i64, tpu.core_type = #tpu.core_type<tc>, window_params = [{transform_indices = @transform_0, window_bounds = array<i64: 2, 1, 2, 128>}, {transform_indices = @transform_1, window_bounds = array<i64: 2, 1, 2, 128>}, {transform_indices = @transform_2, window_bounds = array<i64: 2, 1, 2, 128>}, {transform_indices = @transform_3, window_bounds = array<i64: 2, 1, 2, 128>}, {transform_indices = @transform_4, window_bounds = array<i64: 1, 1>}]} {
    %c0_i32 = arith.constant 0 : i32
    %0 = arith.cmpi eq, %arg1, %c0_i32 : i32
    %c0_i32_0 = arith.constant 0 : i32
    %1 = arith.cmpi eq, %arg2, %c0_i32_0 : i32
    %2 = arith.andi %0, %1 : i1
    %3 = arith.extui %2 : i1 to i32
    %c0_i32_1 = arith.constant 0 : i32
    %4 = arith.cmpi ne, %3, %c0_i32_1 : i32
    scf.if %4 {
      %cst_25 = arith.constant 0.000000e+00 : f32
      %35 = vector.broadcast %cst_25 : f32 to vector<4x128xf32>
      %c0_26 = arith.constant 0 : index
      %c0_27 = arith.constant 0 : index
      %36 = vector.load %arg8[%c0_26, %c0_27] : memref<4x128xf32, #tpu.memory_space<vmem>>, vector<4x128xf32>
      tpu.vector_store %arg8[%c0_26, %c0_27], %35 {strides = array<i32>} : memref<4x128xf32, #tpu.memory_space<vmem>>, vector<4x128xf32>,
    } else {
    }
    %c0 = arith.constant 0 : index
    %c0_2 = arith.constant 0 : index
    %c0_3 = arith.constant 0 : index
    %c0_4 = arith.constant 0 : index
    %5 = vector.load %arg3[%c0, %c0_2, %c0_3, %c0_4] : memref<2x1x2x128xf32, #tpu.memory_space<vmem>>, vector<2x1x2x128xf32>
    %6 = vector.shape_cast %5 : vector<2x1x2x128xf32> to vector<2x2x128xf32>
    %7 = vector.shape_cast %6 : vector<2x2x128xf32> to vector<4x128xf32>
    %c0_5 = arith.constant 0 : index
    %c0_6 = arith.constant 0 : index
    %c0_7 = arith.constant 0 : index
    %c0_8 = arith.constant 0 : index
    %8 = vector.load %arg4[%c0_5, %c0_6, %c0_7, %c0_8] : memref<2x1x2x128xf32, #tpu.memory_space<vmem>>, vector<2x1x2x128xf32>
    %9 = vector.shape_cast %8 : vector<2x1x2x128xf32> to vector<2x2x128xf32>
    %10 = vector.shape_cast %9 : vector<2x2x128xf32> to vector<4x128xf32>
    %c0_9 = arith.constant 0 : index
    %c0_10 = arith.constant 0 : index
    %c0_11 = arith.constant 0 : index
    %c0_12 = arith.constant 0 : index
    %11 = vector.load %arg5[%c0_9, %c0_10, %c0_11, %c0_12] : memref<2x1x2x128xf32, #tpu.memory_space<vmem>>, vector<2x1x2x128xf32>
    %12 = vector.shape_cast %11 : vector<2x1x2x128xf32> to vector<2x2x128xf32>
    %13 = vector.shape_cast %12 : vector<2x2x128xf32> to vector<4x128xf32>
    %c0_13 = arith.constant 0 : index
    %c0_14 = arith.constant 0 : index
    %c0_15 = arith.constant 0 : index
    %c0_16 = arith.constant 0 : index
    %14 = vector.load %arg6[%c0_13, %c0_14, %c0_15, %c0_16] : memref<2x1x2x128xf32, #tpu.memory_space<vmem>>, vector<2x1x2x128xf32>
    %15 = vector.shape_cast %14 : vector<2x1x2x128xf32> to vector<2x2x128xf32>
    %16 = vector.shape_cast %15 : vector<2x2x128xf32> to vector<4x128xf32>
    %17 = arith.subf %13, %16 : vector<4x128xf32>
    %18 = math.absf %17 : vector<4x128xf32>
    %19 = arith.subf %7, %10 : vector<4x128xf32>
    %20 = math.absf %19 : vector<4x128xf32>
    %cst = arith.constant 1.000000e+00 : f32
    %21 = vector.broadcast %cst : f32 to vector<4x128xf32>
    %22 = arith.subf %21, %20 : vector<4x128xf32>
    %23 = arith.minimumf %20, %22 : vector<4x128xf32>
    %cst_17 = arith.constant 2.000000e+00 : f32
    %24 = vector.broadcast %cst_17 : f32 to vector<4x128xf32>
    %25 = arith.mulf %24, %23 : vector<4x128xf32>
    %c0_18 = arith.constant 0 : index
    %c0_19 = arith.constant 0 : index
    %26 = vector.load %arg8[%c0_18, %c0_19] : memref<4x128xf32, #tpu.memory_space<vmem>>, vector<4x128xf32>
    %27 = arith.addf %18, %25 : vector<4x128xf32>
    %28 = arith.addf %26, %27 : vector<4x128xf32>
    %c0_20 = arith.constant 0 : index
    %c0_21 = arith.constant 0 : index
    %29 = vector.load %arg8[%c0_20, %c0_21] : memref<4x128xf32, #tpu.memory_space<vmem>>, vector<4x128xf32>
    tpu.vector_store %arg8[%c0_20, %c0_21], %28 {strides = array<i32>} : memref<4x128xf32, #tpu.memory_space<vmem>>, vector<4x128xf32>,
    %c0_i32_22 = arith.constant 0 : i32
    %30 = arith.cmpi eq, %arg1, %c0_i32_22 : i32
    %c0_i32_23 = arith.constant 0 : i32
    %31 = arith.cmpi eq, %arg2, %c0_i32_23 : i32
    %32 = arith.andi %30, %31 : i1
    %33 = arith.extui %32 : i1 to i32
    %c0_i32_24 = arith.constant 0 : i32
    %34 = arith.cmpi ne, %33, %c0_i32_24 : i32
    scf.if %34 {
      %c0_25 = arith.constant 0 : index
      %c0_26 = arith.constant 0 : index
      %35 = vector.load %arg8[%c0_25, %c0_26] : memref<4x128xf32, #tpu.memory_space<vmem>>, vector<4x128xf32>
      %36 = vector.shape_cast %35 : vector<4x128xf32> to vector<1x4x128xf32>
      %cst_27 = arith.constant dense<0.000000e+00> : vector<1xf32>
      %37 = vector.multi_reduction <add>, %36, %cst_27 [1, 2] : vector<1x4x128xf32> to vector<1xf32>
      %38 = vector.shape_cast %37 : vector<1xf32> to vector<1x1x1xf32>
      %39 = vector.extract %38[0, 0, 0] : f32 from vector<1x1x1xf32>
      %c0_28 = arith.constant 0 : index
      %c0_29 = arith.constant 0 : index
      %40 = memref.load %arg7[%c0_28, %c0_29] : memref<1x1xf32, #tpu.memory_space<smem>>
      memref.store %39, %arg7[%c0_28, %c0_29] : memref<1x1xf32, #tpu.memory_space<smem>>
    } else {
    }
    return
  }
  func.func @transform_0(%arg0: i32, %arg1: i32, %arg2: i32) -> (i32, i32, i32, i32) {
    %c1_i32 = arith.constant 1 : i32
    %0 = arith.muli %arg0, %c1_i32 : i32
    %1 = arith.addi %0, %arg1 : i32
    %c0_i32 = arith.constant 0 : i32
    %c0_i32_0 = arith.constant 0 : i32
    %c0_i32_1 = arith.constant 0 : i32
    return %1, %c0_i32, %arg2, %c0_i32_0 : i32, i32, i32, i32
  }
  func.func @transform_1(%arg0: i32, %arg1: i32, %arg2: i32) -> (i32, i32, i32, i32) {
    %c1_i32 = arith.constant 1 : i32
    %0 = arith.muli %arg0, %c1_i32 : i32
    %1 = arith.addi %0, %arg1 : i32
    %c0_i32 = arith.constant 0 : i32
    %c0_i32_0 = arith.constant 0 : i32
    %c0_i32_1 = arith.constant 0 : i32
    return %1, %c0_i32, %arg2, %c0_i32_0 : i32, i32, i32, i32
  }
  func.func @transform_2(%arg0: i32, %arg1: i32, %arg2: i32) -> (i32, i32, i32, i32) {
    %c1_i32 = arith.constant 1 : i32
    %0 = arith.muli %arg0, %c1_i32 : i32
    %1 = arith.addi %0, %arg1 : i32
    %c1_i32_0 = arith.constant 1 : i32
    %c0_i32 = arith.constant 0 : i32
    %c0_i32_1 = arith.constant 0 : i32
    return %1, %c1_i32_0, %arg2, %c0_i32 : i32, i32, i32, i32
  }
  func.func @transform_3(%arg0: i32, %arg1: i32, %arg2: i32) -> (i32, i32, i32, i32) {
    %c1_i32 = arith.constant 1 : i32
    %0 = arith.muli %arg0, %c1_i32 : i32
    %1 = arith.addi %0, %arg1 : i32
    %c1_i32_0 = arith.constant 1 : i32
    %c0_i32 = arith.constant 0 : i32
    %c0_i32_1 = arith.constant 0 : i32
    return %1, %c1_i32_0, %arg2, %c0_i32 : i32, i32, i32, i32
  }
  func.func @transform_4(%arg0: i32, %arg1: i32, %arg2: i32) -> (i32, i32) {
    %c0_i32 = arith.constant 0 : i32
    %c0_i32_0 = arith.constant 0 : i32
    return %arg0, %c0_i32 : i32, i32
  }
}

</mosaic_0001>

<bundles_post_ra>
// kernel: tpu_custom_call.1
= control target key start
LH: loop header
LB: loop body
LE: loop exit
PB: predicated region body
PF: predicated region fallthrough
CT: control target
= control target key end

     0   :  { %9 = vsyncpa [#allocation4], 0  ;;  %s358_s0 = inlined_call_operand.hbm [shape: f32[2,4,2,128], index: 0, kind: input, shape index: {}]   ;;  %s359_s1 = inlined_call_operand.hbm [shape: f32[2,4,2,128], index: 1, kind: input, shape index: {}]   ;;  %s360_s2 = inlined_call_operand.hbm [shape: f32[2,4,2,128], index: 2, kind: input, shape index: {}]   ;;  %s361_s3 = inlined_call_operand.hbm [shape: f32[2,4,2,128], index: 3, kind: input, shape index: {}]   ;;  %s362_s4 = inlined_call_operand.hbm [shape: f32[1,1], index: 4, kind: output, shape index: {}]  }
   0x1   :  { %10 = vsyncpa [#allocation7], 0 }
   0x2   :  { %11 = vsyncpa [#allocation10], 0 }
   0x3   :  { %12 = vsyncpa [#allocation5], 0  ;;  %s296_s15 = smov [#allocation6]   ;;  %s297_s17 = smov [#allocation3]  }
   0x4   :  { %s40_s16 = sshll.u32 %s296_s15, 4  ;;  %s23_s18 = sshll.u32 %s297_s17, 4  ;;  %s41_s16 = int_to_ptr.vmem [resolvable:$true] %s40_s16  ;;  %s24_s18 = int_to_ptr.vmem [resolvable:$true] %s23_s18 }
   0x5   :  { %s202_s19 = scalar_lea.vmem %s41_s16, 64  ;;  %p207_p1 = scmp.lt.s32.totalorder %s41_s16, %s41_s16 }
   0x6   :  { %p203_p0 = scmp.ne.s32.totalorder %s41_s16, %s202_s19  ;;  %p208_p2 = scmp.lt.s32.totalorder %s202_s19, %s202_s19 }
   0x8   :  { %p209_p3 = por %p208_p2, %p207_p1 }
   0xa   :  { %p210_p4 = pnand %p209_p3, %p203_p0 }
   0xc   :  { %213 = shalt.err (!%p210_p4)
}
   0xd   :  { %s298_s20 = smov 128   ;;  %s299_s21 = smov 32  }
   0xe   :  { %s300_s22 = smov 2   ;;  %s180_s27 = scalar_lea.hbm %s360_s2, 32 }
   0xf   :  { %46 = dma.hbm_to_vmem [thread:$0]  %s359_s1, 64, %s41_s16, [#allocation7], %s298_s20, %s299_s21, %s300_s22  }
  0x10   :  { %s222_s28 = scalar_lea.vmem %s24_s18, 64  ;;  %p227_p6 = scmp.lt.s32.totalorder %s24_s18, %s24_s18 }
  0x11   :  { %p223_p5 = scmp.ne.s32.totalorder %s24_s18, %s222_s28  ;;  %p228_p7 = scmp.lt.s32.totalorder %s222_s28, %s222_s28 }
  0x13   :  { %p229_p8 = por %p228_p7, %p227_p6 }
  0x15   :  { %p230_p9 = pnand %p229_p8, %p223_p5 }
  0x17   :  { %233 = shalt.err (!%p230_p9)
}
  0x18   :  { %29 = dma.hbm_to_vmem [thread:$0]  %s358_s0, 64, %s24_s18, [#allocation4], %s298_s20, %s299_s21, %s300_s22  }
  0x19   :  { %s181_s6 = scalar_lea.hbm %s361_s3, 32  ;;  %s301_s7 = smov [#allocation8]  }
  0x1a   :  { %s58_s2 = sshll.u32 %s301_s7, 4  ;;  %s302_s8 = smov [#allocation9]   ;;  %s59_s2 = int_to_ptr.vmem [resolvable:$true] %s58_s2 }
  0x1b   :  { %s76_s9 = sshll.u32 %s302_s8, 4  ;;  %s244_s10 = scalar_lea.vmem %s59_s2, 64  ;;  %s77_s9 = int_to_ptr.vmem [resolvable:$true] %s76_s9 }
  0x1c   :  { %p245_p10 = scmp.ne.s32.totalorder %s59_s2, %s244_s10  ;;  %p249_p11 = scmp.lt.s32.totalorder %s59_s2, %s59_s2 }
  0x1d   :  { %p250_p12 = scmp.lt.s32.totalorder %s244_s10, %s244_s10 }
  0x1f   :  { %p251_p13 = por %p250_p12, %p249_p11 }
  0x21   :  { %p252_p0 = pnand %p251_p13, %p245_p10 }
  0x23   :  { %255 = shalt.err (!%p252_p0)
}
  0x24   :  { %64 = dma.hbm_to_vmem [thread:$0]  %s180_s27, 64, %s59_s2, [#allocation7], %s298_s20, %s299_s21, %s300_s22  }
  0x25   :  { %s267_s0 = scalar_lea.vmem %s77_s9, 64  ;;  %p272_p2 = scmp.lt.s32.totalorder %s77_s9, %s77_s9 }
  0x26   :  { %p268_p1 = scmp.ne.s32.totalorder %s77_s9, %s267_s0  ;;  %p273_p3 = scmp.lt.s32.totalorder %s267_s0, %s267_s0 }
  0x28   :  { %p274_p4 = por %p273_p3, %p272_p2 }
  0x2a   :  { %p275_p5 = pnand %p274_p4, %p268_p1 }
  0x2c   :  { %278 = shalt.err (!%p275_p5)
}
  0x2d   :  { %82 = dma.hbm_to_vmem [thread:$0]  %s181_s6, 64, %s77_s9, [#allocation10], %s298_s20, %s299_s21, %s300_s22  }
  0x2e   :  { %288 = dma.done.wait [#allocation4], 64  }
  0x2f   :  { %289 = vsyncadd [#allocation4], 4294967232 }
  0x30   :  { %290 = dma.done.wait [#allocation7], 128  }
  0x31   :  { %291 = vsyncadd [#allocation7], 4294967168 }
  0x32   :  { %292 = dma.done.wait [#allocation10], 64  }
  0x33   :  { %293 = vsyncadd [#allocation10], 4294967232  ;;  %v303_v0 = vmov 0.0   ;;  %v110_v1 = vld [vmem:[#allocation3] sm:$0x3]  ;;  %v141_v17 = vlaneseq  ;;  %vm151_vm0 = vcmask 1043456  }
  0x34   :  { %109 = vst [vmem:[#allocation2] sm:$0xf] %v303_v0  ;;  %v111_v2 = vld [vmem:[#allocation3 + $0x2] sm:$0x3]  ;;  %v112_v3 = vld [vmem:[#allocation6] sm:$0x3] }
  0x35   :  { %v113_v4 = vld [vmem:[#allocation6 + $0x2] sm:$0x3]  ;;  %v114_v5 = vld [vmem:[#allocation8] sm:$0x3]  ;;  %v115_v6 = vld [vmem:[#allocation8 + $0x2] sm:$0x3]  ;;  %v122_v7 = vsub.f32 %v110_v1, %v112_v3 }
  0x36   :  { %v116_v8 = vld [vmem:[#allocation9] sm:$0x3]  ;;  %v117_v9 = vld [vmem:[#allocation9 + $0x2] sm:$0x3]  ;;  %v123_v10 = vsub.f32 %v111_v2, %v113_v4  ;;  %v304_v15 = vmov 1983009808  }
  0x37   :  { %v118_v11 = vsub.f32 %v114_v5, %v116_v8  ;;  %v124_v12 = vand.u32 2147483647, %v122_v7  ;;  %v119_v13 = vsub.f32 %v115_v6, %v117_v9  ;;  %v139_v16 = vunpack.c.l.s4 %v304_v15  ;;  %s305_s11 = smov [#allocation11]  }
  0x38   :  { %v125_v14 = vand.u32 2147483647, %v123_v10  ;;  %v142_v25 = vshrl.u32 %v141_v17, 7 }
  0x39   :  { %v126_v18 = vsub.f32 1.0, %v124_v12  ;;  %v120_v20 = vand.u32 2147483647, %v118_v11  ;;  %v121_v22 = vand.u32 2147483647, %v119_v13  ;;  %v140_v24 = vunpack.c.0.s8 %v139_v16 }
  0x3a   :  { %v127_v19 = vsub.f32 1.0, %v125_v14 }
  0x3b   :  { %v128_v21 = vmin.f32 %v124_v12, %v126_v18  ;;  %v143_v30 = vsub.s32 %v140_v24, %v142_v25  ;;  %v132_v32 = vld [vmem:[#allocation2] sm:$0xf] }
  0x3c   :  { %v129_v23 = vmin.f32 %v125_v14, %v127_v19 }
  0x3d   :  { %v130_v26 = vmul.f32 2.0, %v128_v21 }
  0x3e   :  { %v131_v27 = vmul.f32 2.0, %v129_v23 }
  0x3f   :  { %v133_v28 = vadd.f32 %v130_v26, %v120_v20 }
  0x40   :  { %v134_v29 = vadd.f32 %v131_v27, %v121_v22 }
  0x42   :  { %v137_v31 = vcombine.low %v133_v28, %v134_v29 }
  0x44   :  { %v144_v33 = vrot.slane %v137_v31, %v143_v30 }
  0x46   :  { %v146_v34 = vadd.f32 %v144_v33, %v132_v32 }
  0x48   :  { %147 = vst [vmem:[#allocation2] sm:$0xf] %v146_v34 }
  0x4f   :  { %v150_v35 = vld [vmem:[#allocation2] sm:$0xf] }
  0x50   :  { %v152_v36 = vsel %vm151_vm0, %v150_v35, 0.0 }
  0x51   :  { %153 = vadd.xlane.f32.xlu0 %v152_v36 }
  0xda   :  { %v154_v37 = vpop.xlane.xlu0 %153 }
  0xdb   :  { %v155_v38 = vrot.slane %v154_v37, 4 }
  0xdd   :  { %v156_v39 = vadd.f32 %v155_v38, %v154_v37 }
  0xdf   :  { %v157_v40 = vrot.slane %v156_v39, 2 }
  0xe1   :  { %v158_v41 = vadd.f32 %v157_v40, %v156_v39 }
  0xe3   :  { %v159_v42 = vrot.slane %v158_v41, 1 }
  0xe5   :  { %v160_v43 = vadd.f32 %v159_v42, %v158_v41 }
  0xe7   :  { %182 = vpush %v160_v43 }
 0x118   :  { %s183_s3 = spop %182 }
 0x119   :  { %163 = sst [smem:[#allocation11]] %s183_s3 }
 0x11a   :  { %171 = dma.smem_to_hbm %s305_s11, 16, %s362_s4, [#allocation5]  }
 0x11b   :  { %294 = dma.done.wait [#allocation5], 16  }
 0x11c   :  { %295 = vsyncadd [#allocation5], 4294967280 }
 0x11d   :  { %175 = sfence }
 0x11e   :  { %176 = vsyncpa [#allocation4], 1 }
 0x11f   :  { %177 = vsyncpa [#allocation7], 1 }
 0x120   :  { %178 = vsyncpa [#allocation10], 1 }
 0x121   :  { %179 = vsyncpa [#allocation5], 1 }

</bundles_post_ra>
